<compile_context>
chip_gen: v7x
topology: tpu7x:2x2x1
jax: 0.10.0
libtpu: 0.0.40
codegen_flags: <defaults>
</compile_context>

<pallas_src>
import functools

import numpy as np
import jax
import jax.numpy as jnp
from jax.experimental import pallas as pl
from jax.experimental.pallas import tpu as pltpu


@functools.lru_cache(maxsize=16)
def _inv_laplacian_circulant_np(H, W):
    """Kt[h*W+w, p*W+q] = k[(p-h)%H, (q-w)%W], k = irfft2(1 / rfft2(laplacian)).

    g_flat @ Kt is mathematically identical to irfft2(rfft2(g) * inv_laplacian)
    (circular-convolution theorem).  Built once per (H, W) on the host in f64.
    """
    lap = np.zeros((H, W), dtype=np.float64)
    lap[0, 0] = 4.0
    lap[0, 1] = -1.0
    lap[1, 0] = -1.0
    lap[0, -1] = -1.0
    lap[-1, 0] = -1.0
    lap_f = np.fft.rfft2(lap)
    lap_f[np.abs(lap_f) < 1e-32] = 1.0            # same DC guard as the module
    k = np.fft.irfft2(1.0 / lap_f, s=(H, W))      # (H, W) real Green's function
    h_idx = np.arange(H)
    w_idx = np.arange(W)
    ph = (h_idx[None, :] - h_idx[:, None]) % H    # ph[h, p] = (p - h) % H
    qw = (w_idx[None, :] - w_idx[:, None]) % W    # qw[w, q] = (q - w) % W
    kt = k[ph[:, None, :, None], qw[None, :, None, :]]     # (H, W, H, W)
    return kt.reshape(H * W, H * W).astype(np.float32)


def _vmem_budget_bytes():
    """~85% of per-core VMEM (generation-aware: v5e/v6e 128 MiB, v7x 64 MiB)."""
    try:
        cap = int(pltpu.get_tpu_info().vmem_capacity_bytes)
    except Exception:
        cap = 64 << 20                     # conservative fallback (v7x per-TC)
    cap = min(max(cap, 32 << 20), 128 << 20)
    return int(cap * 0.85)


def _pick_row_tile(c2, cap=512):
    """Rows (channels) per grid step: full C//2 if small, else a mult-of-8 divisor."""
    if c2 <= cap:
        return c2
    for t in range(cap, 7, -1):
        if c2 % t == 0 and t % 8 == 0:
            return t
    return c2


def _pick_col_tile(HW, tr, budget):
    """Kt/output column tile: full HW when the double-buffered blocks fit the
    VMEM budget, otherwise the largest multiple-of-128 divisor of HW that does."""
    def est(t):
        return 4 * (2 * 2 * tr * HW       # xg / yg row tiles (double-buffered)
                    + 2 * tr * t          # output tile       (double-buffered)
                    + 2 * HW * t) + (2 << 20)   # Kt block + internal scratch
    cands = [HW // k for k in range(1, HW + 1)
             if HW % k == 0 and (HW // k) % 128 == 0]
    if not cands:                          # HW < 128: full-width block only
        cands = [HW]
    for t in cands:                        # descending
        if est(t) <= budget:
            return t
    # Infeasible regime (see TODO above): fail loudly at compile rather than
    # silently clamping.
    return cands[-1]


def _grad_poisson_kernel(xg_ref, yg_ref, kt_ref, out_ref, *, W, HW):
    # xg_ref / yg_ref: (tr, HW) lane-dense x-/y-gradient rows for this tile
    # kt_ref:          (HW, tcol) inverse-Laplacian circulant block
    # out_ref:         (tr, tcol)
    xg = xg_ref[...]
    yg = yg_ref[...]

    # Circular stencils of the module on the flattened row-major HW axis:
    #   gy[h, w] = yg[h, w] - yg[(h+1) % H, w]  -> neighbour at (idx + W) % HW
    #   gx[h, w] = xg[h, w] - xg[h, (w+1) % W]  -> neighbour at idx + 1, except
    #              the last column of each row which wraps back by (W - 1).
    yg_dn = pltpu.roll(yg, shift=HW - W, axis=1) if HW != W else yg
    xg_r1 = pltpu.roll(xg, shift=HW - 1, axis=1)
    xg_wr = pltpu.roll(xg, shift=W - 1, axis=1) if W > 1 else xg
    col = jax.lax.broadcasted_iota(jnp.int32, xg.shape, 1)
    last_col = (col % W) == (W - 1)
    xg_right = jnp.where(last_col, xg_wr, xg_r1)

    g = (xg - xg_right) + (yg - yg_dn)

    # Poisson solve: one lane-dense MXU matmul against the circulant block.
    out_ref[...] = jnp.dot(g, kt_ref[...], preferred_element_type=jnp.float32)


@jax.jit
def gradient2tensor(x):
    """x: (B, C, H, W) -> (B, C//2, H, W), same semantics as the PyTorch module."""
    B, C, H, W = x.shape
    assert C % 2 == 0, "channel dim must be even (x/y gradient halves)"
    c2 = C // 2
    HW = H * W

    # Zero-copy view: (B, 2, C//2, H*W); half 0 = x-gradients, half 1 = y-grads.
    x4 = x.astype(jnp.float32).reshape(B, 2, c2, HW)
    kt = jnp.asarray(_inv_laplacian_circulant_np(H, W))    # (HW, HW) f32, cached

    tr = _pick_row_tile(c2)
    budget = _vmem_budget_bytes()
    tcol = _pick_col_tile(HW, tr, budget)

    kernel = functools.partial(_grad_poisson_kernel, W=W, HW=HW)

    out_flat = pl.pallas_call(
        kernel,
        out_shape=jax.ShapeDtypeStruct((B, c2, HW), jnp.float32),
        grid_spec=pltpu.PrefetchScalarGridSpec(
            num_scalar_prefetch=0,
            grid=(B, c2 // tr, HW // tcol),
            in_specs=[
                # x-gradient rows: index independent of the column axis, so the
                # tile is fetched once per (batch, channel-tile).
                pl.BlockSpec((None, None, tr, HW), lambda b, i, j: (b, 0, i, 0)),
                # y-gradient rows.
                pl.BlockSpec((None, None, tr, HW), lambda b, i, j: (b, 1, i, 0)),
                # Circulant columns: VMEM-resident when tcol == HW (constant
                # index_map -> single DMA), streamed double-buffered otherwise.
                pl.BlockSpec((HW, tcol), lambda b, i, j: (0, j)),
            ],
            out_specs=pl.BlockSpec((None, tr, tcol), lambda b, i, j: (b, i, j)),
        ),
        compiler_params=pltpu.CompilerParams(
            # Every grid step writes a distinct output tile (no accumulation
            # axis), so all axes are independent; the column axis gives v7x's
            # second TensorCore work when B*C//2 yields only one row tile.
            dimension_semantics=("parallel", "parallel", "parallel"),
            vmem_limit_bytes=budget,
        ),
    )(x4, x4, kt)

    return out_flat.reshape(B, c2, H, W).astype(x.dtype)


if __name__ == "__main__":
    B, C, H, W = 2, 4, 16, 16
    key = jax.random.PRNGKey(0)
    x = jax.random.normal(key, (B, C, H, W), dtype=jnp.float32)

    out = gradient2tensor(x)
    jax.block_until_ready(out)
    assert out.shape == (B, C // 2, H, W)
    assert out.dtype == x.dtype

    # Pure-JAX (f32 FFT) reference for a numerical sanity check.
    c2 = C // 2
    xg = x[:, :c2].reshape(B * c2, H, W)
    yg = x[:, c2:].reshape(B * c2, H, W)
    g = (xg - jnp.roll(xg, -1, axis=2)) + (yg - jnp.roll(yg, -1, axis=1))
    lap = np.zeros((H, W), np.float64)
    lap[0, 0], lap[0, 1], lap[1, 0], lap[0, -1], lap[-1, 0] = 4, -1, -1, -1, -1
    lap_f = np.fft.rfft2(lap)
    lap_f[np.abs(lap_f) < 1e-32] = 1.0
    inv_lap = jnp.asarray(1.0 / lap_f)                       # -> complex64
    ref = jnp.fft.irfft2(jnp.fft.rfft2(g) * inv_lap[None], s=(H, W))
    ref = ref.reshape(B, c2, H, W)
    err = float(jnp.max(jnp.abs(out - ref)))
    scale = float(jnp.max(jnp.abs(ref))) + 1e-6
    assert err <= 1e-3 * max(1.0, scale), f"max|err|={err}, scale={scale}"

    print("KERNEL_OK")
</pallas_src>

<mosaic_0001>
module attributes {stable_mosaic.version = 11 : i64} {
  func.func @_grad_poisson_kernel(%arg0: i32, %arg1: i32, %arg2: i32, %arg3: memref<1x1x2x256xf32, #tpu.memory_space<vmem>>, %arg4: memref<1x1x2x256xf32, #tpu.memory_space<vmem>>, %arg5: memref<256x256xf32, #tpu.memory_space<vmem>>, %arg6: memref<1x2x256xf32, #tpu.memory_space<vmem>>) attributes {dimension_semantics = [#tpu.dimension_semantics<parallel>, #tpu.dimension_semantics<parallel>, #tpu.dimension_semantics<parallel>], iteration_bounds = array<i64: 2, 1, 1>, scalar_prefetch = 0 : i64, scratch_operands = 0 : i64, tpu.core_type = #tpu.core_type<tc>, window_params = [{transform_indices = @transform_0, window_bounds = array<i64: 1, 1, 2, 256>}, {transform_indices = @transform_1, window_bounds = array<i64: 1, 1, 2, 256>}, {transform_indices = @transform_2, window_bounds = array<i64: 256, 256>}, {transform_indices = @transform_3, window_bounds = array<i64: 1, 2, 256>}]} {
    %c0 = arith.constant 0 : index
    %c0_0 = arith.constant 0 : index
    %c0_1 = arith.constant 0 : index
    %c0_2 = arith.constant 0 : index
    %0 = vector.load %arg3[%c0, %c0_0, %c0_1, %c0_2] : memref<1x1x2x256xf32, #tpu.memory_space<vmem>>, vector<1x1x2x256xf32>
    %1 = vector.shape_cast %0 : vector<1x1x2x256xf32> to vector<2x256xf32>
    %c0_3 = arith.constant 0 : index
    %c0_4 = arith.constant 0 : index
    %c0_5 = arith.constant 0 : index
    %c0_6 = arith.constant 0 : index
    %2 = vector.load %arg4[%c0_3, %c0_4, %c0_5, %c0_6] : memref<1x1x2x256xf32, #tpu.memory_space<vmem>>, vector<1x1x2x256xf32>
    %3 = vector.shape_cast %2 : vector<1x1x2x256xf32> to vector<2x256xf32>
    %c240_i32 = arith.constant 240 : i32
    %4 = tpu.dynamic_rotate %3 by %c240_i32 dim 1 : vector<2x256xf32>, i32 -> vector<2x256xf32>
    %c255_i32 = arith.constant 255 : i32
    %5 = tpu.dynamic_rotate %1 by %c255_i32 dim 1 : vector<2x256xf32>, i32 -> vector<2x256xf32>
    %c15_i32 = arith.constant 15 : i32
    %6 = tpu.dynamic_rotate %1 by %c15_i32 dim 1 : vector<2x256xf32>, i32 -> vector<2x256xf32>
    %7 = tpu.iota {dimensions = array<i32: 1>} : vector<2x256xi32>
    %c16_i32 = arith.constant 16 : i32
    %c0_i32 = arith.constant 0 : i32
    %8 = arith.cmpi eq, %c16_i32, %c0_i32 : i32
    %c1_i32 = arith.constant 1 : i32
    %9 = arith.select %8, %c1_i32, %c16_i32 : i32
    %10 = vector.broadcast %9 : i32 to vector<2x256xi32>
    %11 = arith.remsi %7, %10 : vector<2x256xi32>
    %c0_i32_7 = arith.constant 0 : i32
    %12 = vector.broadcast %c0_i32_7 : i32 to vector<2x256xi32>
    %13 = arith.cmpi ne, %11, %12 : vector<2x256xi32>
    %c0_i32_8 = arith.constant 0 : i32
    %14 = vector.broadcast %c0_i32_8 : i32 to vector<2x256xi32>
    %15 = arith.cmpi slt, %11, %14 : vector<2x256xi32>
    %c0_i32_9 = arith.constant 0 : i32
    %16 = arith.cmpi slt, %9, %c0_i32_9 : i32
    %17 = vector.broadcast %16 : i1 to vector<2x256xi1>
    %18 = vector.broadcast %17 : vector<2x256xi1> to vector<2x256xi1>
    %19 = arith.xori %15, %18 : vector<2x256xi1>
    %20 = arith.andi %19, %13 : vector<2x256xi1>
    %21 = vector.broadcast %9 : i32 to vector<2x256xi32>
    %22 = arith.addi %11, %21 : vector<2x256xi32>
    %23 = arith.select %20, %22, %11 : vector<2x256xi1>, vector<2x256xi32>
    %c15_i32_10 = arith.constant 15 : i32
    %24 = vector.broadcast %c15_i32_10 : i32 to vector<2x256xi32>
    %25 = arith.cmpi eq, %23, %24 : vector<2x256xi32>
    %26 = arith.select %25, %6, %5 : vector<2x256xi1>, vector<2x256xf32>
    %27 = arith.subf %1, %26 : vector<2x256xf32>
    %28 = arith.subf %3, %4 : vector<2x256xf32>
    %29 = arith.addf %27, %28 : vector<2x256xf32>
    %c0_11 = arith.constant 0 : index
    %c0_12 = arith.constant 0 : index
    %30 = vector.load %arg5[%c0_11, %c0_12] : memref<256x256xf32, #tpu.memory_space<vmem>>, vector<256x256xf32>
    %cst = arith.constant dense<0.000000e+00> : vector<2x256xf32>
    %31 = tpu.matmul %29, %30, %cst {dimension_numbers = #tpu.dot_dimension_numbers<[1], [0], [0], [1], [0, 0, 1, 1], [], []>} : vector<2x256xf32>, vector<256x256xf32>, vector<2x256xf32> -> vector<2x256xf32>
    %c0_13 = arith.constant 0 : index
    %c0_14 = arith.constant 0 : index
    %c0_15 = arith.constant 0 : index
    %32 = vector.load %arg6[%c0_13, %c0_14, %c0_15] : memref<1x2x256xf32, #tpu.memory_space<vmem>>, vector<1x2x256xf32>
    %33 = vector.shape_cast %32 : vector<1x2x256xf32> to vector<2x256xf32>
    %34 = vector.shape_cast %31 : vector<2x256xf32> to vector<1x2x256xf32>
    tpu.vector_store %arg6[%c0_13, %c0_14, %c0_15], %34 {strides = array<i32>} : memref<1x2x256xf32, #tpu.memory_space<vmem>>, vector<1x2x256xf32>,
    return
  }
  func.func @transform_0(%arg0: i32, %arg1: i32, %arg2: i32) -> (i32, i32, i32, i32) {
    %c0_i32 = arith.constant 0 : i32
    %c0_i32_0 = arith.constant 0 : i32
    %c0_i32_1 = arith.constant 0 : i32
    return %arg0, %c0_i32, %arg1, %c0_i32_0 : i32, i32, i32, i32
  }
  func.func @transform_1(%arg0: i32, %arg1: i32, %arg2: i32) -> (i32, i32, i32, i32) {
    %c1_i32 = arith.constant 1 : i32
    %c0_i32 = arith.constant 0 : i32
    %c0_i32_0 = arith.constant 0 : i32
    return %arg0, %c1_i32, %arg1, %c0_i32 : i32, i32, i32, i32
  }
  func.func @transform_2(%arg0: i32, %arg1: i32, %arg2: i32) -> (i32, i32) {
    %c0_i32 = arith.constant 0 : i32
    %c0_i32_0 = arith.constant 0 : i32
    return %c0_i32, %arg2 : i32, i32
  }
  func.func @transform_3(%arg0: i32, %arg1: i32, %arg2: i32) -> (i32, i32, i32) {
    %c0_i32 = arith.constant 0 : i32
    return %arg0, %arg1, %arg2 : i32, i32, i32
  }
}

</mosaic_0001>

<bundles_post_ra>
// kernel: gradient2tensor.1
= control target key start
LH: loop header
LB: loop body
LE: loop exit
PB: predicated region body
PF: predicated region fallthrough
CT: control target
= control target key end

     0   :  { %8 = vsyncpa [#allocation3], 0  ;;  %s900_s12 = smov 0   ;;  %s902_s13 = smov 0   ;;  %s1000_s0 = inlined_call_operand.vmem [shape: f32[2,2,2,256], index: 0, kind: input, shape index: {}, may-alias: {0,1}]   ;;  %s1001_s1 = inlined_call_operand.vmem [shape: f32[2,2,2,256], index: 1, kind: input, shape index: {}, may-alias: {0,1}]   ;;  %s1002_s2 = inlined_call_operand.hbm [shape: f32[256,256], index: 2, kind: input, shape index: {}]   ;;  %s1003_s3 = inlined_call_operand.vmem [shape: f32[2,2,256], index: 3, kind: output, shape index: {}]  }
   0x1   :  { %s904_s14 = smov 0  }
   0x2 LB: > { %s692_s15 = sadd.s32 4294967295, %s871_s14   ;;  %s33_s16 = sadd.s32 1, %s867_s13  ;;  %s871_s14 = sphi %s904_s14, %s14_s14   ;;  %s867_s13 = sphi %s902_s13, %s1013_s13   ;;  %s863_s12 = sphi %s900_s12, %s1012_s12  }
   0x3   : > { %p35_p0 = scmp.ge.s32.totalorder %s33_s16, 2  ;;  %p694_p1 = scmp.ge.s32.totalorder %s871_s14, 1 }
   0x4   : > { %p150_p2 = scmp.lt.s32.totalorder %s871_s14, 3  ;;  %p925_p4 = scmp.eq.s32.totalorder %s692_s15, 0 }
   0x5   : > { %s1015_s16 = smov (%p35_p0, %s33_s16), 0  ;;  %s873_s19 = smov [#allocation2]  }
   0x6   : > { %p921_p3 = pnand %p694_p1, %p150_p2  ;;  %s165_s20 = sshll.u32 %s873_s19, 4  ;;  %s166_s20 = int_to_ptr.vmem [resolvable:$true] %s165_s20 }
   0x7   : > { %s1008_s18 = scalar_select %p925_p4, 1, 0 }
   0x8   : > { %s1007_s17 = scalar_select %p921_p3, 1, 0 }
   0x9   : > { %p780_p5 = pneg %p921_p3  ;;  %s817_s24 = scalar_lea.hbm %s1002_s2, 8192 }
   0xa   : > { %p818_p7 = scmp.ne.s32.totalorder %s1002_s2, %s817_s24  ;;  %p824_p11 = scmp.lt.u32.totalorder %s817_s24, %s1002_s2 }
   0xb   : > { %p933_p6 = pnand %p925_p4, %p780_p5 }
   0xd   : > { %p819_p8 = pneg %p933_p6 }
   0xf   : > { %p820_p9 = pnand %p819_p8, %p818_p7 }
  0x11   : > { %p821_p10 = pneg %p820_p9 }
  0x13   : > { %p826_p12 = pnand %p824_p11, %p821_p10 }
  0x15   : > { %829 = shalt.err (!%p826_p12)
}
  0x16   : > { %s830_s29 = scalar_lea.vmem %s166_s20, 8192  ;;  %p838_p2 = scmp.lt.s32.totalorder %s166_s20, %s166_s20 }
  0x17   : > { %p831_p13 = scmp.ne.s32.totalorder %s166_s20, %s830_s29  ;;  %p839_p5 = scmp.lt.s32.totalorder %s830_s29, %s830_s29 }
  0x19   : > { %p833_p0 = pnand %p831_p13, %p819_p8  ;;  %p840_p4 = por %p839_p5, %p838_p2 }
  0x1b   : > { %p834_p1 = pneg %p833_p0 }
  0x1d   : > { %p841_p3 = pnand %p840_p4, %p834_p1 }
  0x1f   : > { %844 = shalt.err (!%p841_p3)
}
  0x20   : > { %s874_s30 = smov 256   ;;  %s875_s4 = smov 16  }
  0x21   : > { %783 = dma.hbm_to_vmem [thread:$0]  (!%p933_p6), %s1002_s2, 8192, %s166_s20, [#allocation3], %s874_s30, %s874_s30, %s875_s4  }
  0x22   : > { %p1010_p7 = scmp.ne.s32.totalorder %s1007_s17, 0 }
  0x23   : > { %p1011_p9 = scmp.ne.s32.totalorder (!%p1010_p7), %s1008_s18, 0 }
  0x24   : > { %206 = sbr.rel (%p1010_p7) target bundleno = 406 (0x196), region = 32 }
  0x2b   : > { %858 = dma.done.wait (%p1011_p9), [#allocation3], 8192  }
  0x2c   : > { %860 = vsyncadd (%p1011_p9), [#allocation3], 4294959104  ;;  %p252_p3 = scmp.lt.s32.totalorder %s863_s12, 1  ;;  %v292_v0 = vlaneseq  ;;  %v876_v1 = vmov 1983009808   ;;  %v388_v8 = vld [vmem:[#allocation2 + $0x8] sm:$0xff] }
  0x2d   : > { %v290_v2 = vunpack.c.l.s4 %v876_v1  ;;  %v390_v10 = vld [vmem:[#allocation2 + $0x18] sm:$0xff]  ;;  %v387_v11 = vld [vmem:[#allocation2] sm:$0xff]  ;;  %v389_v12 = vld [vmem:[#allocation2 + $0x10] sm:$0xff]  ;;  %s877_s18 = smov 15   ;;  %s878_s19 = smov 127  }
  0x2e   : > { %s1017_s12 = smov (!%p252_p3, %s863_s12), 1  ;;  %v293_v3 = vshrl.u32 %v292_v0, 7  ;;  %v712_v13 = vpack.c.bf16 %v390_v10, %v388_v8  ;;  %v714_v14 = vpack.c.bf16 %v389_v12, %v387_v11  ;;  %v392_v15 = vld [vmem:[#allocation2 + $0x28] sm:$0xff]  ;;  %v394_v16 = vld [vmem:[#allocation2 + $0x38] sm:$0xff]  ;;  %v391_v17 = vld [vmem:[#allocation2 + $0x20] sm:$0xff]  ;;  %s879_s20 = smov 112  }
  0x2f   : > { %v291_v4 = vunpack.c.0.s8 %v290_v2  ;;  %s709_s7 = sshll.u32 %s1017_s12, 3  ;;  %v716_v20 = vpack.c.bf16 %v394_v16, %v392_v15  ;;  %v393_v21 = vld [vmem:[#allocation2 + $0x30] sm:$0xff]  ;;  %v396_v22 = vld [vmem:[#allocation2 + $0x48] sm:$0xff]  ;;  %v398_v23 = vld [vmem:[#allocation2 + $0x58] sm:$0xff]  ;;  %s711_s21 = sshll.u32 %s1017_s12, 2 }
  0x30   : > { %s260_s10 = scalar_lea.vmem %s1000_s0, %s709_s7  ;;  %s625_s17 = scalar_lea.vmem %s1001_s1, %s709_s7  ;;  %713 = vmatprep.subr.bf16.mxu0 %v712_v13  ;;  %v718_v24 = vpack.c.bf16 %v393_v21, %v391_v17  ;;  %v720_v25 = vpack.c.bf16 %v398_v23, %v396_v22  ;;  %v395_v26 = vld [vmem:[#allocation2 + $0x40] sm:$0xff]  ;;  %v397_v27 = vld [vmem:[#allocation2 + $0x50] sm:$0xff]  ;;  %v400_v29 = vld [vmem:[#allocation2 + $0x68] sm:$0xff] }
  0x31   : > { %v968_v5 = vsub.s32 %v291_v4, %v293_v3  ;;  %v973_v6 = vld [vmem:[%s260_s10] sm:$0xf]  ;;  %v975_v7 = vld [vmem:[%s625_s17 + $0x4] sm:$0xf]  ;;  %715 = vmatpush1.bf16.msra.mxu0 %v714_v14  ;;  %v402_v30 = vld [vmem:[#allocation2 + $0x78] sm:$0xff]  ;;  %v722_v31 = vpack.c.bf16 %v397_v27, %v395_v26  ;;  %s284_s24 = scalar_lea.vmem %s1003_s3, %s711_s21 }
  0x32   : > { %717 = vmatprep.subr.bf16.mxu0 %v716_v20  ;;  %v724_v32 = vpack.c.bf16 %v402_v30, %v400_v29  ;;  %v399_v33 = vld [vmem:[#allocation2 + $0x60] sm:$0xff]  ;;  %v401_v34 = vld [vmem:[#allocation2 + $0x70] sm:$0xff]  ;;  %v404_v35 = vld [vmem:[#allocation2 + $0x88] sm:$0xff] }
  0x33   : > { %v315_v9 = vrot.slane %v973_v6, %v968_v5  ;;  %v295_v19 = vrot.slane %v975_v7, %v968_v5  ;;  %v406_v36 = vld [vmem:[#allocation2 + $0x98] sm:$0xff]  ;;  %v726_v37 = vpack.c.bf16 %v401_v34, %v399_v33  ;;  %v403_v39 = vld [vmem:[#allocation2 + $0x80] sm:$0xff]  ;;  %v405_v40 = vld [vmem:[#allocation2 + $0x90] sm:$0xff] }
  0x34   : > { %v728_v38 = vpack.c.bf16 %v406_v36, %v404_v35  ;;  %v408_v41 = vld [vmem:[#allocation2 + $0xa8] sm:$0xff]  ;;  %v410_v42 = vld [vmem:[#allocation2 + $0xb8] sm:$0xff]  ;;  %v730_v43 = vpack.c.bf16 %v405_v40, %v403_v39  ;;  %v407_v45 = vld [vmem:[#allocation2 + $0xa0] sm:$0xff] }
  0x35   : > { %326 = vrot.lane.b32.xlu1 %v315_v9, %s877_s18  ;;  %319 = vrot.lane.b32.xlu0 %v315_v9, %s878_s19  ;;  %v316_v18 = vcombine.high %v315_v9, %v315_v9  ;;  %v296_v28 = vcombine.high %v295_v19, %v295_v19  ;;  %v732_v44 = vpack.c.bf16 %v410_v42, %v408_v41  ;;  %v409_v46 = vld [vmem:[#allocation2 + $0xb0] sm:$0xff]  ;;  %v412_v47 = vld [vmem:[#allocation2 + $0xc8] sm:$0xff]  ;;  %v414_v48 = vld [vmem:[#allocation2 + $0xd8] sm:$0xff] }
  0x36   : > { %719 = vmatpush1.bf16.msra.mxu0 %v718_v24  ;;  %v734_v49 = vpack.c.bf16 %v409_v46, %v407_v45  ;;  %v736_v50 = vpack.c.bf16 %v414_v48, %v412_v47  ;;  %v411_v51 = vld [vmem:[#allocation2 + $0xc0] sm:$0xff]  ;;  %v413_v52 = vld [vmem:[#allocation2 + $0xd0] sm:$0xff]  ;;  %v416_v53 = vld [vmem:[#allocation2 + $0xe8] sm:$0xff]  ;;  %v304_v48 = vand.u32 127, %v292_v0 }
  0x37   : > { %721 = vmatprep.subr.bf16.mxu0 %v720_v25  ;;  %v418_v54 = vld [vmem:[#allocation2 + $0xf8] sm:$0xff]  ;;  %v738_v55 = vpack.c.bf16 %v413_v52, %v411_v51  ;;  %v415_v57 = vld [vmem:[#allocation2 + $0xe0] sm:$0xff]  ;;  %v417_v58 = vld [vmem:[#allocation2 + $0xf0] sm:$0xff] }
  0x38   : > { %v740_v56 = vpack.c.bf16 %v418_v54, %v416_v53  ;;  %v420_v59 = vld [vmem:[#allocation2 + $0x108] sm:$0xff]  ;;  %v422_v60 = vld [vmem:[#allocation2 + $0x118] sm:$0xff]  ;;  %v742_v61 = vpack.c.bf16 %v417_v58, %v415_v57  ;;  %v419_v63 = vld [vmem:[#allocation2 + $0x100] sm:$0xff]  ;;  %vm330_vm0 = vcmp.lt.s32.totalorder %v304_v48, 15  ;;  %vm323_vm1 = vcmp.lt.s32.totalorder %v304_v48, 127 }
  0x39   : > { %328 = vrot.lane.b32.xlu1 %v316_v18, %s877_s18  ;;  %321 = vrot.lane.b32.xlu0 %v316_v18, %s878_s19  ;;  %v744_v62 = vpack.c.bf16 %v422_v60, %v420_v59  ;;  %v421_v1 = vld [vmem:[#allocation2 + $0x110] sm:$0xff]  ;;  %v424_v2 = vld [vmem:[#allocation2 + $0x128] sm:$0xff]  ;;  %v426_v3 = vld [vmem:[#allocation2 + $0x138] sm:$0xff]  ;;  %vm305_vm4 = vcmp.lt.s32.totalorder %v304_v48, 112 }
  0x3a   : > { %723 = vmatpush1.bf16.msra.mxu0 %v722_v31  ;;  %v746_v4 = vpack.c.bf16 %v421_v1, %v419_v63  ;;  %v748_v8 = vpack.c.bf16 %v426_v3, %v424_v2  ;;  %v423_v9 = vld [vmem:[#allocation2 + $0x120] sm:$0xff]  ;;  %v425_v10 = vld [vmem:[#allocation2 + $0x130] sm:$0xff]  ;;  %v428_v11 = vld [vmem:[#allocation2 + $0x148] sm:$0xff] }
  0x3b   : > { %725 = vmatprep.subr.bf16.mxu0 %v724_v32  ;;  %v430_v12 = vld [vmem:[#allocation2 + $0x158] sm:$0xff]  ;;  %v750_v13 = vpack.c.bf16 %v425_v10, %v423_v9  ;;  %v427_v15 = vld [vmem:[#allocation2 + $0x140] sm:$0xff]  ;;  %v429_v16 = vld [vmem:[#allocation2 + $0x150] sm:$0xff] }
  0x3c   : > { %v752_v14 = vpack.c.bf16 %v430_v12, %v428_v11  ;;  %v432_v17 = vld [vmem:[#allocation2 + $0x168] sm:$0xff]  ;;  %v434_v18 = vld [vmem:[#allocation2 + $0x178] sm:$0xff]  ;;  %v431_v21 = vld [vmem:[#allocation2 + $0x160] sm:$0xff] }
  0x3d   : > { %301 = vrot.lane.b32.xlu1 %v296_v28, %s879_s20  ;;  %299 = vrot.lane.b32.xlu0 %v295_v19, %s879_s20  ;;  %v754_v19 = vpack.c.bf16 %v429_v16, %v427_v15  ;;  %v756_v20 = vpack.c.bf16 %v434_v18, %v432_v17  ;;  %v433_v22 = vld [vmem:[#allocation2 + $0x170] sm:$0xff]  ;;  %v436_v23 = vld [vmem:[#allocation2 + $0x188] sm:$0xff]  ;;  %v438_v24 = vld [vmem:[#allocation2 + $0x198] sm:$0xff] }
  0x3e   : > { %727 = vmatpush1.bf16.msra.mxu0 %v726_v37  ;;  %v758_v25 = vpack.c.bf16 %v433_v22, %v431_v21  ;;  %v760_v26 = vpack.c.bf16 %v438_v24, %v436_v23  ;;  %v435_v27 = vld [vmem:[#allocation2 + $0x180] sm:$0xff]  ;;  %v437_v28 = vld [vmem:[#allocation2 + $0x190] sm:$0xff]  ;;  %v440_v29 = vld [vmem:[#allocation2 + $0x1a8] sm:$0xff] }
  0x3f   : > { %729 = vmatprep.subr.bf16.mxu0 %v728_v38  ;;  %v442_v30 = vld [vmem:[#allocation2 + $0x1b8] sm:$0xff]  ;;  %v762_v31 = vpack.c.bf16 %v437_v28, %v435_v27  ;;  %v439_v33 = vld [vmem:[#allocation2 + $0x1a0] sm:$0xff]  ;;  %v441_v34 = vld [vmem:[#allocation2 + $0x1b0] sm:$0xff] }
  0x40   : > { %v764_v32 = vpack.c.bf16 %v442_v30, %v440_v29  ;;  %v444_v35 = vld [vmem:[#allocation2 + $0x1c8] sm:$0xff]  ;;  %v446_v36 = vld [vmem:[#allocation2 + $0x1d8] sm:$0xff]  ;;  %v766_v37 = vpack.c.bf16 %v441_v34, %v439_v33  ;;  %v443_v39 = vld [vmem:[#allocation2 + $0x1c0] sm:$0xff] }
  0x41   : > { %v768_v38 = vpack.c.bf16 %v446_v36, %v444_v35  ;;  %v445_v40 = vld [vmem:[#allocation2 + $0x1d0] sm:$0xff]  ;;  %v448_v41 = vld [vmem:[#allocation2 + $0x1e8] sm:$0xff]  ;;  %v450_v42 = vld [vmem:[#allocation2 + $0x1f8] sm:$0xff] }
  0x42   : > { %731 = vmatpush1.bf16.msra.mxu0 %v730_v43  ;;  %v770_v43 = vpack.c.bf16 %v445_v40, %v443_v39  ;;  %v447_v45 = vld [vmem:[#allocation2 + $0x1e0] sm:$0xff]  ;;  %v449_v46 = vld [vmem:[#allocation2 + $0x1f0] sm:$0xff] }
  0x43   : > { %733 = vmatprep.subr.bf16.mxu0 %v732_v44  ;;  %v772_v44 = vpack.c.bf16 %v450_v42, %v448_v41  ;;  %v774_v47 = vpack.c.bf16 %v449_v46, %v447_v45 }
  0x46   : > { %735 = vmatpush1.bf16.msra.mxu0 %v734_v49  ;;  %v333_v49 = vadd.s32 128, %v304_v48 }
  0x47   : > { %737 = vmatprep.subr.bf16.mxu0 %v736_v50  ;;  %v338_v50 = vand.u32 15, %v304_v48 }
  0x48   : > { %v345_v51 = vand.u32 15, %v333_v49 }
  0x49   : > { %vm358_vm2 = vcmp.eq.s32.totalorder %v338_v50, 15 }
  0x4a   : > { %739 = vmatpush1.bf16.msra.mxu0 %v738_v55  ;;  %vm359_vm3 = vcmp.eq.s32.totalorder %v345_v51, 15 }
  0x4b   : > { %741 = vmatprep.subr.bf16.mxu0 %v740_v56 }
  0x4e   : > { %743 = vmatpush1.bf16.msra.mxu0 %v742_v61 }
  0x4f   : > { %745 = vmatprep.subr.bf16.mxu0 %v744_v62 }
  0x52   : > { %747 = vmatpush1.bf16.msra.mxu0 %v746_v4 }
  0x53   : > { %749 = vmatprep.subr.bf16.mxu0 %v748_v8 }
  0x56   : > { %751 = vmatpush1.bf16.msra.mxu0 %v750_v13 }
  0x57   : > { %753 = vmatprep.subr.bf16.mxu0 %v752_v14 }
  0x5a   : > { %755 = vmatpush1.bf16.msra.mxu0 %v754_v19 }
  0x5b   : > { %757 = vmatprep.subr.bf16.mxu0 %v756_v20 }
  0x5e   : > { %759 = vmatpush1.bf16.msra.mxu0 %v758_v25 }
  0x5f   : > { %761 = vmatprep.subr.bf16.mxu0 %v760_v26 }
  0x62   : > { %763 = vmatpush1.bf16.msra.mxu0 %v762_v31 }
  0x63   : > { %765 = vmatprep.subr.bf16.mxu0 %v764_v32 }
  0x66   : > { %767 = vmatpush1.bf16.msra.mxu0 %v766_v37 }
  0x67   : > { %769 = vmatprep.subr.bf16.mxu0 %v768_v38 }
  0x6a   : > { %771 = vmatpush1.bf16.msra.mxu0 %v770_v43 }
  0x6b   : > { %773 = vmatprep.subr.bf16.mxu0 %v772_v44 }
  0x6e   : > { %775 = vmatpush1.bf16.msra.mxu0 %v774_v47 }
  0xa7   : > { %v327_v52 = vpop.permute.xlu1 %326  ;;  %v320_v53 = vpop.permute.xlu0 %319 }
  0xab   : > { %v329_v54 = vpop.permute.xlu1 %328  ;;  %v322_v55 = vpop.permute.xlu0 %321 }
  0xac   : > { %v331_v56 = vsel %vm330_vm0, %v327_v52, %v329_v54  ;;  %v332_v57 = vsel %vm330_vm0, %v329_v54, %v327_v52  ;;  %v324_v58 = vsel %vm323_vm1, %v320_v53, %v322_v55  ;;  %v325_v59 = vsel %vm323_vm1, %v322_v55, %v320_v53 }
  0xad   : > { %v360_v60 = vsel %vm358_vm2, %v332_v57, %v324_v58  ;;  %v361_v61 = vsel %vm359_vm3, %v331_v56, %v325_v59 }
  0xae   : > { %v364_v0 = vcombine.low %v360_v60, %v361_v61 }
  0xaf   : > { %v302_v62 = vpop.permute.xlu1 %301  ;;  %v300_v63 = vpop.permute.xlu0 %299 }
  0xb0   : > { %v306_v1 = vsel %vm305_vm4, %v300_v63, %v302_v62  ;;  %v307_v2 = vsel %vm305_vm4, %v302_v62, %v300_v63  ;;  %v371_v3 = vrot.slane %v364_v0, %v968_v5 }
  0xb1   : > { %v376_v4 = vcombine.low %v306_v1, %v307_v2 }
  0xb2   : > { %v373_v9 = vsub.f32 %v973_v6, %v371_v3 }
  0xb3   : > { %v383_v8 = vrot.slane %v376_v4, %v968_v5 }
  0xb5   : > { %v385_v10 = vsub.f32 %v975_v7, %v383_v8 }
  0xb7   : > { %v386_v11 = vadd.f32 %v385_v10, %v373_v9 }
  0xb9   : > { %v458_v12 = vrot.slane %v386_v11, %v968_v5 }
  0xbb   : > { %v459_v13 = vcombine.high %v458_v12, %v458_v12 }
  0xbd   : > { %526 = vmatprep.mubr.f32.mxu0 %v459_v13 }
  0xbe   : > { %527 = vmatmul.mubr.f32.vlgmr.msra.gmra.mrb[0].mxu0 %v458_v12 }
 0x191   : > { %v528_v14 = vpop.f32.mrb[0].mxu0 }
 0x192   : > { %v530_v15 = vpop.f32.mrb[1].mxu0 }
 0x193   : > { %v535_v16 = vcombine.low %v528_v14, %v530_v15 }
 0x195   : > { %706 = vst.sshfl [vmem:[%s284_s24] sm:$0x33 pattern:$0x76325410] %v535_v16 }
 0x196 PF: > { %s14_s14 = sadd.s32 1, %s871_s14   ;;  %s1012_s12 = smov %s867_s13 }
 0x197   : > { %p11_p4 = scmp.ge.s32.totalorder %s14_s14, 4   ;;  %s1013_s13 = smov %s1015_s16 }
 0x199   :  { %13 = sbr.rel (!%p11_p4) target bundleno = 2 (0x2), region = 71 }
 0x1a0   :  { %583 = vsyncpa [#allocation3], 1 }
 0x1a1   :  { %585 = vsyncpa [#allocation3 + $0x1], 1 }

</bundles_post_ra>
